<compile_context>
chip_gen: v7x
topology: tpu7x:2x2x1
jax: 0.10.0
libtpu: 0.0.40
codegen_flags: <defaults>
</compile_context>

<pallas_src>
import jax
import jax.numpy as jnp
from jax import lax
from jax.experimental import pallas as pl
from jax.experimental.pallas import tpu as pltpu

# ---- model hyper-params (small, consistent with the module's __init__) -----
B = 2                  # batch
C_IN = 4               # num_input_channels
H = W = 16             # img_size
FEAT = 32              # stand-in for feature_extractor.num_feature_channel
CONT_DIM = 16          # continuous_latent_dim
DISC_DIM = 8           # disc_latent_dim
LATENT = CONT_DIM + DISC_DIM
PAD = 128              # lane-dense padding for the stats slab
TEMP = 0.67            # sample_temperature
INV_TEMP = 1.0 / TEMP
EPS = 1e-12
PIX = C_IN * H * W     # decoder output width (lane-dense, 1024)
N_SPATIAL = B * H * W  # 512

VMEM = pl.BlockSpec(memory_space=pltpu.MemorySpace.VMEM)


# ---------------------------------------------------------------------------
# Single fused kernel.  Feature extractor (1x1 conv + ReLU) works on a
# lane-dense (FEAT, B*H*W) layout; global average pool is a dot_general
# contracting the spatial axis; the three _Inference heads are one (FEAT,128)
# lane-dense matmul with LogSoftmax done as a masked reduction over the full
# slab; the Sample module (reparameterized Gaussian + Gumbel-Softmax) feeds
# the decoder directly via a split matmul (no latent scratch, no K padding).
#
# TODO(synk): the real backbone (get_densenet / get_wide_resnet /
# get_preact_resnet) and the `Decoder` class are external modules not given
# here; a 1x1-conv+ReLU stand-in and a single linear projection latent ->
# (C_IN*H*W) pixels are used instead.
# ---------------------------------------------------------------------------
def vae_kernel(x_ref, pool_ref, w_fe_ref, b_fe_ref,
               w_heads_ref, b_heads_ref,
               w_dec_c_ref, w_dec_d_ref, b_dec_ref,
               eps_ref, unif_ref,
               recon_ref, stats_ref):
    # --- feature extractor: lane-dense (FEAT, B*H*W), bf16 MXU, f32 accum ----
    feat = jnp.dot(w_fe_ref[...], x_ref[...],
                   preferred_element_type=jnp.float32)          # (FEAT, N)
    feat = jnp.maximum(feat + b_fe_ref[...], 0.0)               # bias + ReLU (f32)

    # --- global average pool: contract the spatial axis (no transpose) -------
    avg = lax.dot_general(pool_ref[...], feat.astype(jnp.bfloat16),
                          dimension_numbers=(((1,), (1,)), ((), ())),
                          preferred_element_type=jnp.float32)   # (B, FEAT)

    # --- fused inference heads: one lane-dense (FEAT, 128) matmul ------------
    # columns [0:16)=mean, [16:32)=log_sigma, [32:40)=disc logits, rest zero
    stats = (jnp.dot(avg.astype(jnp.bfloat16), w_heads_ref[...],
                     preferred_element_type=jnp.float32) + b_heads_ref[...])

    # disc LogSoftmax(dim=1) as a masked reduction over the full (B,128) slab
    col = lax.broadcasted_iota(jnp.int32, (B, PAD), 1)
    disc_mask = (col >= 2 * CONT_DIM) & (col < 2 * CONT_DIM + DISC_DIM)
    logits_m = jnp.where(disc_mask, stats, -jnp.inf)
    m = jnp.max(logits_m, axis=1, keepdims=True)
    lse = jnp.log(jnp.sum(jnp.exp(logits_m - m), axis=1, keepdims=True)) + m
    lalpha = stats - lse                                        # valid on disc lanes
    stats_ref[...] = jnp.where(disc_mask, lalpha, stats)        # single slab write

    # --- Sample module (disc_label=None, mixup=False path) -------------------
    mean = stats[:, :CONT_DIM]
    lsig = stats[:, CONT_DIM:2 * CONT_DIM]
    z = mean + jnp.exp(lsig) * eps_ref[...]                     # (B, CONT), f32

    # Gumbel-Softmax over the full slab (masked), exact divide for parity
    gumbel = -jnp.log(-jnp.log(unif_ref[...] + EPS) + EPS)      # (B, 128)
    logit = (lalpha + gumbel) * INV_TEMP
    logit_m = jnp.where(disc_mask, logit, -jnp.inf)
    mg = jnp.max(logit_m, axis=1, keepdims=True)
    e = jnp.exp(logit_m - mg)                                   # 0 off disc lanes
    soft_slab = e / jnp.sum(e, axis=1, keepdims=True)
    soft = soft_slab[:, 2 * CONT_DIM:2 * CONT_DIM + DISC_DIM]   # (B, DISC)

    # --- split decoder: z and soft feed the MXU directly (no latent scratch,
    # --- no K=128 zero-padded weight; K=16 and K=8 bf16 dots) -----------------
    recon_ref[...] = (jnp.dot(z.astype(jnp.bfloat16), w_dec_c_ref[...],
                              preferred_element_type=jnp.float32)
                      + jnp.dot(soft.astype(jnp.bfloat16), w_dec_d_ref[...],
                                preferred_element_type=jnp.float32)
                      + b_dec_ref[...])                          # (B, PIX)


# ---------------------------------------------------------------------------
# Full forward (mirrors VariationalAutoEncoder.forward with disc_label=None).
# ---------------------------------------------------------------------------
def vae_forward(params, input_img_nchw, eps, unif):
    # NCHW -> channels-first flattened (C_IN, B*H*W): lane-dense on spatial
    x_t = (jnp.transpose(input_img_nchw, (1, 0, 2, 3))
           .reshape(C_IN, N_SPATIAL).astype(jnp.bfloat16))
    # unif padded to a lane-dense (B,128) slab (only disc lanes matter)
    unif_slab = jnp.full((B, PAD), 0.5, jnp.float32)
    unif_slab = unif_slab.at[:, 2 * CONT_DIM:2 * CONT_DIM + DISC_DIM].set(unif)

    recon_flat, stats = pl.pallas_call(
        vae_kernel,
        out_shape=(jax.ShapeDtypeStruct((B, PIX), jnp.float32),
                   jax.ShapeDtypeStruct((B, PAD), jnp.float32)),
        in_specs=[VMEM] * 11,
        out_specs=(VMEM, VMEM),
    )(x_t, params['pool'],
      params['w_fe_t'], params['b_fe'],
      params['w_heads'], params['b_heads'],
      params['w_dec_c'], params['w_dec_d'], params['b_dec'],
      eps, unif_slab)

    # slice the lane-dense stats slab back into the module's three outputs
    norm_mean = stats[:, :CONT_DIM]
    norm_log_sigma = stats[:, CONT_DIM:2 * CONT_DIM]
    disc_log_alpha = stats[:, 2 * CONT_DIM:2 * CONT_DIM + DISC_DIM]

    reconstruction = recon_flat.reshape(B, C_IN, H, W)          # NCHW
    return reconstruction, norm_mean, norm_log_sigma, disc_log_alpha


def init_params(key):
    ks = jax.random.split(key, 8)

    def linear(kw, fan_in, fan_out):
        bound = 1.0 / jnp.sqrt(fan_in)
        w = jax.random.uniform(kw, (fan_in, fan_out), jnp.float32, -bound, bound)
        b = jnp.zeros((fan_out,), jnp.float32)
        return w, b

    p = {}
    # feature extractor (stand-in 1x1 conv), stored transposed + bf16 for MXU
    w_fe, b_fe = linear(ks[0], C_IN, FEAT)
    p['w_fe_t'] = w_fe.T.astype(jnp.bfloat16)                    # (FEAT, C_IN)
    p['b_fe'] = b_fe.reshape(FEAT, 1)                            # lane-broadcast bias

    # pack the three head weights into one lane-dense (FEAT, 128) matrix (bf16)
    w_mean, b_mean = linear(ks[1], FEAT, CONT_DIM)
    w_lsig, b_lsig = linear(ks[2], FEAT, CONT_DIM)
    w_disc, b_disc = linear(ks[3], FEAT, DISC_DIM)
    w_heads = jnp.zeros((FEAT, PAD), jnp.float32)
    w_heads = w_heads.at[:, 0:CONT_DIM].set(w_mean)
    w_heads = w_heads.at[:, CONT_DIM:2 * CONT_DIM].set(w_lsig)
    w_heads = w_heads.at[:, 2 * CONT_DIM:2 * CONT_DIM + DISC_DIM].set(w_disc)
    b_heads = jnp.zeros((1, PAD), jnp.float32)
    b_heads = b_heads.at[:, 0:CONT_DIM].set(b_mean)
    b_heads = b_heads.at[:, CONT_DIM:2 * CONT_DIM].set(b_lsig)
    b_heads = b_heads.at[:, 2 * CONT_DIM:2 * CONT_DIM + DISC_DIM].set(b_disc)
    p['w_heads'] = w_heads.astype(jnp.bfloat16)
    p['b_heads'] = b_heads

    # decoder weight split into (CONT_DIM, PIX) + (DISC_DIM, PIX), no K padding
    w_dec, b_dec = linear(ks[4], LATENT, PIX)
    p['w_dec_c'] = w_dec[:CONT_DIM, :].astype(jnp.bfloat16)      # (16, 1024)
    p['w_dec_d'] = w_dec[CONT_DIM:, :].astype(jnp.bfloat16)      # (8, 1024)
    p['b_dec'] = b_dec.reshape(1, PIX)

    # global-average-pool expressed as a (B, B*H*W) matmul (1/HW per segment)
    p['pool'] = (jnp.repeat(jnp.eye(B, dtype=jnp.float32), H * W, axis=1)
                 / (H * W)).astype(jnp.bfloat16)
    return p


if __name__ == "__main__":
    key = jax.random.PRNGKey(0)
    k_x, k_p, k_eps, k_unif = jax.random.split(key, 4)

    x = jax.random.normal(k_x, (B, C_IN, H, W), jnp.float32)          # NCHW input
    params = init_params(k_p)
    eps = jax.random.normal(k_eps, (B, CONT_DIM), jnp.float32)        # std_z
    unif = jax.random.uniform(k_unif, (B, DISC_DIM), jnp.float32)     # gumbel unif

    recon, norm_mean, norm_log_sigma, disc_log_alpha = jax.jit(vae_forward)(
        params, x, eps, unif)
    jax.block_until_ready((recon, norm_mean, norm_log_sigma, disc_log_alpha))

    assert recon.shape == (B, C_IN, H, W)
    assert norm_mean.shape == (B, CONT_DIM)
    assert norm_log_sigma.shape == (B, CONT_DIM)
    assert disc_log_alpha.shape == (B, DISC_DIM)
    print("KERNEL_OK")
</pallas_src>

<mosaic_0001>
module attributes {stable_mosaic.version = 11 : i64} {
  func.func @vae_kernel(%arg0: memref<4x512xbf16, #tpu.memory_space<vmem>>, %arg1: memref<2x512xbf16, #tpu.memory_space<vmem>>, %arg2: memref<32x4xbf16, #tpu.memory_space<vmem>>, %arg3: memref<32x1xf32, #tpu.memory_space<vmem>>, %arg4: memref<32x128xbf16, #tpu.memory_space<vmem>>, %arg5: memref<1x128xf32, #tpu.memory_space<vmem>>, %arg6: memref<16x1024xbf16, #tpu.memory_space<vmem>>, %arg7: memref<8x1024xbf16, #tpu.memory_space<vmem>>, %arg8: memref<1x1024xf32, #tpu.memory_space<vmem>>, %arg9: memref<2x16xf32, #tpu.memory_space<vmem>>, %arg10: memref<2x128xf32, #tpu.memory_space<vmem>>, %arg11: memref<2x1024xf32, #tpu.memory_space<vmem>>, %arg12: memref<2x128xf32, #tpu.memory_space<vmem>>) attributes {dimension_semantics = [], scalar_prefetch = 0 : i64, scratch_operands = 0 : i64, tpu.core_type = #tpu.core_type<tc>} {
    %c0 = arith.constant 0 : index
    %c0_0 = arith.constant 0 : index
    %0 = vector.load %arg2[%c0, %c0_0] : memref<32x4xbf16, #tpu.memory_space<vmem>>, vector<32x4xbf16>
    %c0_1 = arith.constant 0 : index
    %c0_2 = arith.constant 0 : index
    %1 = vector.load %arg0[%c0_1, %c0_2] : memref<4x512xbf16, #tpu.memory_space<vmem>>, vector<4x512xbf16>
    %cst = arith.constant dense<0.000000e+00> : vector<32x512xf32>
    %2 = tpu.matmul %0, %1, %cst {dimension_numbers = #tpu.dot_dimension_numbers<[1], [0], [0], [1], [0, 0, 1, 1], [], []>} : vector<32x4xbf16>, vector<4x512xbf16>, vector<32x512xf32> -> vector<32x512xf32>
    %c0_3 = arith.constant 0 : index
    %c0_4 = arith.constant 0 : index
    %3 = vector.load %arg3[%c0_3, %c0_4] : memref<32x1xf32, #tpu.memory_space<vmem>>, vector<32x1xf32>
    %4 = vector.broadcast %3 : vector<32x1xf32> to vector<32x512xf32>
    %5 = arith.addf %2, %4 : vector<32x512xf32>
    %cst_5 = arith.constant 0.000000e+00 : f32
    %6 = vector.broadcast %cst_5 : f32 to vector<32x512xf32>
    %7 = arith.maximumf %5, %6 : vector<32x512xf32>
    %c0_6 = arith.constant 0 : index
    %c0_7 = arith.constant 0 : index
    %8 = vector.load %arg1[%c0_6, %c0_7] : memref<2x512xbf16, #tpu.memory_space<vmem>>, vector<2x512xbf16>
    %9 = arith.truncf %7 : vector<32x512xf32> to vector<32x512xbf16>
    %cst_8 = arith.constant dense<0.000000e+00> : vector<2x32xf32>
    %10 = tpu.matmul %8, %9, %cst_8 {dimension_numbers = #tpu.dot_dimension_numbers<[1], [1], [0], [0], [0, 0, 1, 0], [], []>} : vector<2x512xbf16>, vector<32x512xbf16>, vector<2x32xf32> -> vector<2x32xf32>
    %11 = arith.truncf %10 : vector<2x32xf32> to vector<2x32xbf16>
    %c0_9 = arith.constant 0 : index
    %c0_10 = arith.constant 0 : index
    %12 = vector.load %arg4[%c0_9, %c0_10] : memref<32x128xbf16, #tpu.memory_space<vmem>>, vector<32x128xbf16>
    %cst_11 = arith.constant dense<0.000000e+00> : vector<2x128xf32>
    %13 = tpu.matmul %11, %12, %cst_11 {dimension_numbers = #tpu.dot_dimension_numbers<[1], [0], [0], [1], [0, 0, 1, 1], [], []>} : vector<2x32xbf16>, vector<32x128xbf16>, vector<2x128xf32> -> vector<2x128xf32>
    %c0_12 = arith.constant 0 : index
    %c0_13 = arith.constant 0 : index
    %14 = vector.load %arg5[%c0_12, %c0_13] : memref<1x128xf32, #tpu.memory_space<vmem>>, vector<1x128xf32>
    %15 = vector.broadcast %14 : vector<1x128xf32> to vector<2x128xf32>
    %16 = arith.addf %13, %15 : vector<2x128xf32>
    %17 = tpu.iota {dimensions = array<i32: 1>} : vector<2x128xi32>
    %c32_i32 = arith.constant 32 : i32
    %18 = vector.broadcast %c32_i32 : i32 to vector<2x128xi32>
    %19 = arith.cmpi sge, %17, %18 : vector<2x128xi32>
    %c40_i32 = arith.constant 40 : i32
    %20 = vector.broadcast %c40_i32 : i32 to vector<2x128xi32>
    %21 = arith.cmpi slt, %17, %20 : vector<2x128xi32>
    %22 = arith.andi %19, %21 : vector<2x128xi1>
    %cst_14 = arith.constant 0xFF800000 : f32
    %23 = vector.broadcast %cst_14 : f32 to vector<2x128xf32>
    %24 = arith.select %22, %16, %23 : vector<2x128xi1>, vector<2x128xf32>
    %cst_15 = arith.constant dense<0xFF800000> : vector<2xf32>
    %25 = vector.multi_reduction <maximumf>, %24, %cst_15 [1] : vector<2x128xf32> to vector<2xf32>
    %26 = vector.shape_cast %25 : vector<2xf32> to vector<2x1xf32>
    %27 = vector.broadcast %26 : vector<2x1xf32> to vector<2x128xf32>
    %28 = arith.subf %24, %27 : vector<2x128xf32>
    %29 = math.exp %28 : vector<2x128xf32>
    %cst_16 = arith.constant dense<0.000000e+00> : vector<2xf32>
    %30 = vector.multi_reduction <add>, %29, %cst_16 [1] : vector<2x128xf32> to vector<2xf32>
    %31 = vector.shape_cast %30 : vector<2xf32> to vector<2x1xf32>
    %32 = math.log %31 : vector<2x1xf32>
    %33 = arith.addf %32, %26 : vector<2x1xf32>
    %34 = vector.broadcast %33 : vector<2x1xf32> to vector<2x128xf32>
    %35 = arith.subf %16, %34 : vector<2x128xf32>
    %36 = arith.select %22, %35, %16 : vector<2x128xi1>, vector<2x128xf32>
    %c0_17 = arith.constant 0 : index
    %c0_18 = arith.constant 0 : index
    %37 = vector.load %arg12[%c0_17, %c0_18] : memref<2x128xf32, #tpu.memory_space<vmem>>, vector<2x128xf32>
    tpu.vector_store %arg12[%c0_17, %c0_18], %36 {strides = array<i32>} : memref<2x128xf32, #tpu.memory_space<vmem>>, vector<2x128xf32>,
    %38 = vector.extract_strided_slice %16 {offsets = [0, 0], sizes = [2, 16], strides = [1, 1]} : vector<2x128xf32> to vector<2x16xf32>
    %39 = vector.extract_strided_slice %16 {offsets = [0, 16], sizes = [2, 16], strides = [1, 1]} : vector<2x128xf32> to vector<2x16xf32>
    %40 = math.exp %39 : vector<2x16xf32>
    %c0_19 = arith.constant 0 : index
    %c0_20 = arith.constant 0 : index
    %41 = vector.load %arg9[%c0_19, %c0_20] : memref<2x16xf32, #tpu.memory_space<vmem>>, vector<2x16xf32>
    %42 = arith.mulf %40, %41 : vector<2x16xf32>
    %43 = arith.addf %38, %42 : vector<2x16xf32>
    %c0_21 = arith.constant 0 : index
    %c0_22 = arith.constant 0 : index
    %44 = vector.load %arg10[%c0_21, %c0_22] : memref<2x128xf32, #tpu.memory_space<vmem>>, vector<2x128xf32>
    %cst_23 = arith.constant 9.99999996E-13 : f32
    %45 = vector.broadcast %cst_23 : f32 to vector<2x128xf32>
    %46 = arith.addf %44, %45 : vector<2x128xf32>
    %47 = math.log %46 : vector<2x128xf32>
    %cst_24 = arith.constant 0.000000e+00 : f32
    %48 = vector.broadcast %cst_24 : f32 to vector<2x128xf32>
    %49 = arith.subf %48, %47 : vector<2x128xf32>
    %cst_25 = arith.constant 9.99999996E-13 : f32
    %50 = vector.broadcast %cst_25 : f32 to vector<2x128xf32>
    %51 = arith.addf %49, %50 : vector<2x128xf32>
    %52 = math.log %51 : vector<2x128xf32>
    %cst_26 = arith.constant 0.000000e+00 : f32
    %53 = vector.broadcast %cst_26 : f32 to vector<2x128xf32>
    %54 = arith.subf %53, %52 : vector<2x128xf32>
    %55 = arith.addf %35, %54 : vector<2x128xf32>
    %cst_27 = arith.constant 1.49253726 : f32
    %56 = vector.broadcast %cst_27 : f32 to vector<2x128xf32>
    %57 = arith.mulf %55, %56 : vector<2x128xf32>
    %cst_28 = arith.constant 0xFF800000 : f32
    %58 = vector.broadcast %cst_28 : f32 to vector<2x128xf32>
    %59 = arith.select %22, %57, %58 : vector<2x128xi1>, vector<2x128xf32>
    %cst_29 = arith.constant dense<0xFF800000> : vector<2xf32>
    %60 = vector.multi_reduction <maximumf>, %59, %cst_29 [1] : vector<2x128xf32> to vector<2xf32>
    %61 = vector.shape_cast %60 : vector<2xf32> to vector<2x1xf32>
    %62 = vector.broadcast %61 : vector<2x1xf32> to vector<2x128xf32>
    %63 = arith.subf %59, %62 : vector<2x128xf32>
    %64 = math.exp %63 : vector<2x128xf32>
    %cst_30 = arith.constant dense<0.000000e+00> : vector<2xf32>
    %65 = vector.multi_reduction <add>, %64, %cst_30 [1] : vector<2x128xf32> to vector<2xf32>
    %66 = vector.shape_cast %65 : vector<2xf32> to vector<2x1xf32>
    %67 = vector.broadcast %66 : vector<2x1xf32> to vector<2x128xf32>
    %68 = arith.divf %64, %67 : vector<2x128xf32>
    %69 = vector.extract_strided_slice %68 {offsets = [0, 32], sizes = [2, 8], strides = [1, 1]} : vector<2x128xf32> to vector<2x8xf32>
    %70 = arith.truncf %43 : vector<2x16xf32> to vector<2x16xbf16>
    %c0_31 = arith.constant 0 : index
    %c0_32 = arith.constant 0 : index
    %71 = vector.load %arg6[%c0_31, %c0_32] : memref<16x1024xbf16, #tpu.memory_space<vmem>>, vector<16x1024xbf16>
    %cst_33 = arith.constant dense<0.000000e+00> : vector<2x1024xf32>
    %72 = tpu.matmul %70, %71, %cst_33 {dimension_numbers = #tpu.dot_dimension_numbers<[1], [0], [0], [1], [0, 0, 1, 1], [], []>} : vector<2x16xbf16>, vector<16x1024xbf16>, vector<2x1024xf32> -> vector<2x1024xf32>
    %73 = arith.truncf %69 : vector<2x8xf32> to vector<2x8xbf16>
    %c0_34 = arith.constant 0 : index
    %c0_35 = arith.constant 0 : index
    %74 = vector.load %arg7[%c0_34, %c0_35] : memref<8x1024xbf16, #tpu.memory_space<vmem>>, vector<8x1024xbf16>
    %cst_36 = arith.constant dense<0.000000e+00> : vector<2x1024xf32>
    %75 = tpu.matmul %73, %74, %cst_36 {dimension_numbers = #tpu.dot_dimension_numbers<[1], [0], [0], [1], [0, 0, 1, 1], [], []>} : vector<2x8xbf16>, vector<8x1024xbf16>, vector<2x1024xf32> -> vector<2x1024xf32>
    %76 = arith.addf %72, %75 : vector<2x1024xf32>
    %c0_37 = arith.constant 0 : index
    %c0_38 = arith.constant 0 : index
    %77 = vector.load %arg8[%c0_37, %c0_38] : memref<1x1024xf32, #tpu.memory_space<vmem>>, vector<1x1024xf32>
    %78 = vector.broadcast %77 : vector<1x1024xf32> to vector<2x1024xf32>
    %79 = arith.addf %76, %78 : vector<2x1024xf32>
    %c0_39 = arith.constant 0 : index
    %c0_40 = arith.constant 0 : index
    %80 = vector.load %arg11[%c0_39, %c0_40] : memref<2x1024xf32, #tpu.memory_space<vmem>>, vector<2x1024xf32>
    tpu.vector_store %arg11[%c0_39, %c0_40], %79 {strides = array<i32>} : memref<2x1024xf32, #tpu.memory_space<vmem>>, vector<2x1024xf32>,
    return
  }
}

</mosaic_0001>

<bundles_post_ra>
// kernel: vae_forward.1
= control target key start
LH: loop header
LB: loop body
LE: loop exit
PB: predicated region body
PF: predicated region fallthrough
CT: control target
= control target key end

     0   :  { %v85_v0 = vlaneseq  ;;  %v1118_v2 = vmov 1983009808   ;;  %v1119_v4 = vmov 0   ;;  %vm105_vm0 = vcmask 1041408   ;;  %s1123_s21 = smov 16   ;;  %s1125_s14 = smov 96   ;;  %s1368_s0 = inlined_call_operand.vmem [shape: bf16[4,512], index: 0, kind: input, shape index: {}]   ;;  %s1369_s2 = inlined_call_operand.vmem [shape: bf16[32,4], index: 2, kind: input, shape index: {}]   ;;  %s1370_s3 = inlined_call_operand.vmem [shape: f32[32,1], index: 3, kind: input, shape index: {}]   ;;  %s1371_s1 = inlined_call_operand.vmem [shape: bf16[2,512], index: 1, kind: input, shape index: {}]   ;;  %s1372_s4 = inlined_call_operand.vmem [shape: bf16[32,128], index: 4, kind: input, shape index: {}]   ;;  %s1373_s5 = inlined_call_operand.vmem [shape: f32[1,128], index: 5, kind: input, shape index: {}]   ;;  %s1374_s9 = inlined_call_operand.vmem [shape: f32[2,16], index: 9, kind: input, shape index: {}]   ;;  %s1375_s10 = inlined_call_operand.vmem [shape: f32[2,128], index: 10, kind: input, shape index: {}]   ;;  %s1376_s12 = inlined_call_operand.vmem [shape: f32[2,128], index: 12, kind: output, shape index: {1}]   ;;  %s1377_s7 = inlined_call_operand.vmem [shape: bf16[8,1024], index: 7, kind: input, shape index: {}]   ;;  %s1378_s6 = inlined_call_operand.vmem [shape: bf16[16,1024], index: 6, kind: input, shape index: {}]   ;;  %s1379_s8 = inlined_call_operand.vmem [shape: f32[1,1024], index: 8, kind: input, shape index: {}]   ;;  %s1380_s11 = inlined_call_operand.vmem [shape: f32[2,1024], index: 11, kind: output, shape index: {0}]  }
   0x1   :  { %v45_v1 = vld [vmem:[%s1368_s0] sm:$0xff]  ;;  %v83_v3 = vunpack.c.l.s4 %v1118_v2  ;;  %150 = vmatprep.mubr.bf16.mxu0 %v1119_v4  ;;  %203 = vmatprep.mubr.bf16.mxu1 %v1119_v4  ;;  %v48_v9 = vld [vmem:[%s1370_s3 + $0x10] sm:$0xff]  ;;  %v47_v11 = vld [vmem:[%s1370_s3 + $0x8] sm:$0xff]  ;;  %vm98_vm1 = vcmask 31744   ;;  %v1120_v21 = vmov 1966171168  }
   0x2   :  { %v1197_v5 = vshrl.u32 %v85_v0, 7  ;;  %1089 = vset.pattern.permute.xlu0 %v1119_v4  ;;  %1090 = vset.pattern.permute.xlu1 %v1119_v4  ;;  %v81_v7 = vcombine.high %v45_v1, %v45_v1  ;;  %v46_v8 = vld [vmem:[%s1370_s3] sm:$0xff]  ;;  %v49_v12 = vld [vmem:[%s1370_s3 + $0x18] sm:$0xff]  ;;  %v1093_v20 = vld [vmem:[%s1369_s2 + $0x8] sm:$0xff]   ;;  %v259_v22 = vunpack.c.l.s4 %v1120_v21  ;;  %v1121_v29 = vmov 0.0  }
   0x3   :  { %v84_v6 = vunpack.c.0.s8 %v83_v3  ;;  %52 = vperm.xlu0 %1089, %v46_v8   ;;  %62 = vperm.xlu1 %1090, %v48_v9   ;;  %v1092_v19 = vld [vmem:[%s1369_s2] sm:$0xff]   ;;  %v1095_v31 = vld [vmem:[%s1372_s4 + $0x8] sm:$0xff]   ;;  %vm1122_vm2 = vmmov 0   ;;  %vm382_vm3 = vcmask 261120   ;;  %vm524_vm7 = vcmask 1043456  }
   0x4   :  { %v260_v23 = vunpack.c.0.s8 %v259_v22  ;;  %v1033_v24 = vld.sshfl [vmem:[%s1371_s1] sm:$0x33 pattern:$0x75316420]  ;;  %vm520_vm8 = vcmask 64512   ;;  %vm753_vm9 = vcmask 130048  }
   0x5   :  { %v1208_v10 = vsub.s32 %v84_v6, %v1197_v5  ;;  %v257_v25 = vcombine.high %v1033_v24, %v1033_v24  ;;  %v1094_v30 = vld [vmem:[%s1372_s4] sm:$0xff]  }
   0x6   :  { %v263_v26 = vsub.s32 %v260_v23, %v1197_v5 }
   0x7   :  { %v88_v13 = vrot.slane %v45_v1, %v1208_v10  ;;  %v95_v14 = vrot.slane %v81_v7, %v1208_v10  ;;  %57 = vperm.xlu0 %1089, %v47_v11   ;;  %67 = vperm.xlu1 %1090, %v49_v12  }
   0x8   :  { %v1234_v27 = vrot.slane %v1033_v24, %v263_v26  ;;  %v1236_v28 = vrot.slane %v257_v25, %v263_v26 }
   0x9   :  { %v96_v15 = vcombine.high %v88_v13, %v88_v13  ;;  %v97_v16 = vcombine.high %v95_v14, %v95_v14  ;;  %v107_v17 = vsel %vm105_vm0, %v88_v13, 0  ;;  %v113_v18 = vsel %vm105_vm0, %v95_v14, 0 }
   0xb   :  { %1027 = vmatprep.subr.msk.bf16.mxu0 %vm105_vm0, %v96_v15  ;;  %1030 = vmatprep.subr.msk.bf16.mxu1 %vm105_vm0, %v97_v16 }
   0xc   :  { %119 = vmatpush1.bf16.msra.mxu0 %v107_v17  ;;  %172 = vmatpush1.bf16.msra.mxu1 %v113_v18 }
   0xd   :  { %1069 = vmatprep.subr.bf16.mxu1 %v1121_v29 }
   0xf   :  { %1028 = vmatmul.mubr.msk.bf16.vlgmr.msra.gmra.mrb[0].mxu0 %vm98_vm1, %v1092_v19  ;;  %1031 = vmatmul.mubr.msk.bf16.vlgmr.msra.gmra.mrb[0].mxu1 %vm98_vm1, %v1092_v19 }
  0x10   :  { %160 = vmatprep.mubr.bf16.mxu0 %v1119_v4  ;;  %213 = vmatprep.mubr.bf16.mxu1 %v1119_v4 }
  0x11   :  { %1070 = vmatpush3.bf16.msra.mxu1 %v1094_v30 }
  0x12   :  { %1071 = vmatprep.subr.bf16.mxu1 %v1121_v29 }
  0x15   :  { %1072 = vmatpush3.bf16.msra.mxu1 %v1095_v31 }
  0x17   :  { %1029 = vmatmul.mubr.msk.bf16.gmra.mrb[4].mxu0 %vm98_vm1, %v1093_v20  ;;  %1032 = vmatmul.mubr.msk.bf16.gmra.mrb[4].mxu1 %vm98_vm1, %v1093_v20 }
  0x18   :  { %310 = vmatprep.mubr.bf16.mxu0 %v1236_v28  ;;  %1073 = vmatprep.mubr.msk.bf16.mxu1 %vm1122_vm2, %v1121_v29  ;;  %v486_v29 = vld [vmem:[%s1378_s6 + $0x10] sm:$0xff] }
  0x82   :  { %v53_v32 = vpop.permute.xlu0 %52  ;;  %v63_v34 = vpop.permute.xlu1 %62 }
  0x86   :  { %v58_v33 = vpop.permute.xlu0 %57  ;;  %v68_v61 = vpop.permute.xlu1 %67 }
  0xe2   :  { %v152_v35 = vpop.f32.mrb[0].mxu0  ;;  %v205_v36 = vpop.f32.mrb[0].mxu1 }
  0xe3   :  { %v153_v37 = vadd.f32 %v152_v35, %v53_v32  ;;  %v206_v38 = vadd.f32 %v205_v36, %v53_v32  ;;  %v154_v39 = vpop.f32.mrb[1].mxu0  ;;  %v207_v40 = vpop.f32.mrb[1].mxu1  ;;  %v273_v35 = vcombine.high %v1236_v28, %v1236_v28  ;;  %v272_v36 = vcombine.high %v1234_v27, %v1234_v27 }
  0xe4   :  { %v155_v41 = vadd.f32 %v154_v39, %v53_v32  ;;  %v208_v42 = vadd.f32 %v207_v40, %v53_v32  ;;  %v156_v43 = vpop.f32.mrb[2].mxu0  ;;  %v209_v44 = vpop.f32.mrb[2].mxu1 }
  0xe5   :  { %v157_v45 = vadd.f32 %v156_v43, %v58_v33  ;;  %v210_v46 = vadd.f32 %v209_v44, %v58_v33  ;;  %v158_v47 = vpop.f32.mrb[3].mxu0  ;;  %v211_v48 = vpop.f32.mrb[3].mxu1  ;;  %v224_v51 = vmax.f32 %v153_v37, 0.0  ;;  %v226_v52 = vmax.f32 %v206_v38, 0.0 }
  0xe6   :  { %v159_v49 = vadd.f32 %v158_v47, %v58_v33  ;;  %v212_v50 = vadd.f32 %v211_v48, %v58_v33  ;;  %v225_v55 = vmax.f32 %v155_v41, 0.0  ;;  %v227_v56 = vmax.f32 %v208_v42, 0.0 }
  0xe7   :  { %v228_v53 = vmax.f32 %v157_v45, 0.0  ;;  %v230_v54 = vmax.f32 %v210_v46, 0.0  ;;  %v427_v41 = vand.u32 127, %v85_v0 }
  0xe8   :  { %v229_v57 = vmax.f32 %v159_v49, 0.0  ;;  %v231_v58 = vmax.f32 %v212_v50, 0.0 }
  0xe9   :  { %v241_v59 = vpack.c.bf16 %v228_v53, %v224_v51  ;;  %v243_v60 = vpack.c.bf16 %v230_v54, %v226_v52  ;;  %vm428_vm4 = vcmp.ge.s32.totalorder %v427_v41, 32  ;;  %vm429_vm5 = vcmp.lt.s32.totalorder %v427_v41, 40  ;;  %v449_v53 = vld [vmem:[%s1374_s9] sm:$0x3]  ;;  %s1124_s9 = smov 112  }
  0xea   :  { %v242_v62 = vpack.c.bf16 %v229_v57, %v225_v55  ;;  %v244_v63 = vpack.c.bf16 %v231_v58, %v227_v56  ;;  %v162_v1 = vpop.f32.mrb[4].mxu0  ;;  %v215_v2 = vpop.f32.mrb[4].mxu1  ;;  %vm1259_vm6 = vmand %vm428_vm4, %vm429_vm5  ;;  %v460_v54 = vld [vmem:[%s1375_s10] sm:$0x3] }
  0xeb   :  { %v163_v3 = vadd.f32 %v162_v1, %v63_v34  ;;  %v216_v6 = vadd.f32 %v215_v2, %v63_v34  ;;  %v164_v7 = vpop.f32.mrb[5].mxu0  ;;  %v217_v8 = vpop.f32.mrb[5].mxu1  ;;  %v461_v55 = vadd.f32 1e-12, %v460_v54 }
  0xec   :  { %v165_v9 = vadd.f32 %v164_v7, %v63_v34  ;;  %v218_v11 = vadd.f32 %v217_v8, %v63_v34  ;;  %v166_v12 = vpop.f32.mrb[6].mxu0  ;;  %v219_v13 = vpop.f32.mrb[6].mxu1  ;;  %278 = vmatprep.subr.bf16.mxu0 %v242_v62 }
  0xed   :  { %v167_v14 = vadd.f32 %v166_v12, %v68_v61  ;;  %v220_v15 = vadd.f32 %v219_v13, %v68_v61  ;;  %v168_v16 = vpop.f32.mrb[7].mxu0  ;;  %v221_v17 = vpop.f32.mrb[7].mxu1  ;;  %279 = vmatpush1.bf16.xpose.msra.mxu0 %v241_v59  ;;  %v232_v20 = vmax.f32 %v163_v3, 0.0  ;;  %v234_v21 = vmax.f32 %v216_v6, 0.0 }
  0xee   :  { %v169_v18 = vadd.f32 %v168_v16, %v68_v61  ;;  %v222_v19 = vadd.f32 %v221_v17, %v68_v61  ;;  %v233_v24 = vmax.f32 %v165_v9, 0.0  ;;  %v235_v25 = vmax.f32 %v218_v11, 0.0 }
  0xef   :  { %v236_v22 = vmax.f32 %v167_v14, 0.0  ;;  %v238_v23 = vmax.f32 %v220_v15, 0.0 }
  0xf0   :  { %v237_v26 = vmax.f32 %v169_v18, 0.0  ;;  %v239_v30 = vmax.f32 %v222_v19, 0.0 }
  0xf1   :  { %v245_v31 = vpack.c.bf16 %v236_v22, %v232_v20  ;;  %v247_v32 = vpack.c.bf16 %v238_v23, %v234_v21  ;;  %v493_v22 = vld [vmem:[%s1377_s7] sm:$0xff]  ;;  %v495_v23 = vld [vmem:[%s1377_s7 + $0x10] sm:$0xff] }
  0xf2   :  { %v246_v33 = vpack.c.bf16 %v237_v26, %v233_v24  ;;  %v248_v34 = vpack.c.bf16 %v239_v30, %v235_v25  ;;  %v494_v24 = vld [vmem:[%s1377_s7 + $0x8] sm:$0xff]  ;;  %v1039_v25 = vcombine.high %v493_v22, %v493_v22  ;;  %v1038_v26 = vcombine.low %v493_v22, %v493_v22 }
  0xf3   :  { %v1043_v30 = vcombine.high %v495_v23, %v495_v23 }
  0xf4   :  { %280 = vmatprep.subr.bf16.mxu0 %v246_v33  ;;  %1046 = vmatprep.subr.msk.bf16.mxu1 %vm524_vm7, %v1039_v25  ;;  %v526_v33 = vsel %vm524_vm7, %v1038_v26, 0  ;;  %v945_v26 = vsub.s32 5, %v1197_v5 }
  0xf5   :  { %281 = vmatpush1.bf16.xpose.msra.mxu0 %v245_v31  ;;  %v1042_v31 = vcombine.low %v495_v23, %v495_v23 }
  0xf6   :  { %318 = vmatprep.subr.bf16.mxu0 %v244_v63 }
  0xfc   :  { %311 = vmatmul.mubr.bf16.vlgmr.msra.gmra.mrb[8].mxu0 %v1234_v27  ;;  %v1034_v27 = vld [vmem:[%s1373_s5] ss:$0 sm:$0xff] }
  0xfd   :  { %319 = vmatpush1.bf16.xpose.msra.mxu0 %v243_v60  ;;  %350 = vmatprep.mubr.bf16.mxu0 %v273_v35 }
  0xfe   :  { %320 = vmatprep.subr.bf16.mxu0 %v248_v34  ;;  %v538_v34 = vsel %vm524_vm7, %v1042_v31, 0 }
 0x105   :  { %321 = vmatpush1.bf16.xpose.msra.mxu0 %v247_v32  ;;  %v1041_v32 = vcombine.high %v494_v24, %v494_v24 }
 0x106   :  { %1050 = vmatprep.subr.msk.bf16.mxu0 %vm524_vm7, %v1043_v30 }
 0x10c   :  { %351 = vmatmul.mubr.bf16.vlgmr.msra.gmra.mrb[8].mxu0 %v272_v36  ;;  %v484_v36 = vld [vmem:[%s1378_s6] sm:$0xff] }
 0x10d   :  { %663 = vmatprep.mubr.bf16.mxu0 %v1119_v4  ;;  %632 = vmatpush1.bf16.msra.mxu0 %v538_v34 }
 0x1df   :  { %v352_v37 = vpop.f32.mrb[8].mxu0 }
 0x1e0   :  { %v358_v38 = vpack.c.bf16 %v352_v37, %v352_v37  ;;  %v354_v39 = vpop.f32.mrb[9].mxu0  ;;  %v488_v37 = vld [vmem:[%s1378_s6 + $0x20] sm:$0xff] }
 0x1e1   :  { %v355_v28 = vpop.f32.mrb[10].mxu0  ;;  %v1055_v39 = vcombine.high %v484_v36, %v488_v37 }
 0x1e2   :  { %v356_v40 = vpop.f32.mrb[11].mxu0  ;;  %1074 = vmatmul.mubr.msk.bf16.vlgmr.msra.gmra.mrb[8].mxu1 %vm382_vm3, %v358_v38  ;;  %v1054_v38 = vcombine.low %v484_v36, %v488_v37 }
 0x1e3   :  { %581 = vmatprep.mubr.bf16.mxu1 %v1119_v4  ;;  %550 = vmatpush1.bf16.msra.mxu1 %v526_v33 }
 0x1e4   :  { %1048 = vmatprep.subr.msk.bf16.mxu1 %vm524_vm7, %v1041_v32  ;;  %757 = vmatprep.subr.bf16.mxu0 %v1055_v39 }
 0x2b5   :  { %v420_v42 = vpop.f32.mrb[8].mxu1 }
 0x2b6   :  { %v1263_v43 = vadd.f32 %v1034_v27, %v420_v42  ;;  %v1075_v44 = vpop.f32.mrb[9].mxu1  ;;  %v1040_v27 = vcombine.low %v494_v24, %v494_v24  ;;  %v496_v42 = vld [vmem:[%s1377_s7 + $0x18] sm:$0xff]  ;;  %v941_v24 = vsub.s32 4, %v1197_v5 }
 0x2b7   :  { %v423_v45 = vpop.f32.mrb[10].mxu1  ;;  %v490_v44 = vld [vmem:[%s1378_s6 + $0x30] sm:$0xff] }
 0x2b8   :  { %v1076_v46 = vpop.f32.mrb[11].mxu1  ;;  %v431_v0 = vsel %vm1259_vm6, %v1263_v43, -inf  ;;  %v447_v59 = vmul.f32 1.442695, %v1263_v43  ;;  %v532_v45 = vsel %vm524_vm7, %v1040_v27, 0 }
 0x2b9   :  { %v432_v47 = vsel %vm105_vm0, %v431_v0, -inf  ;;  %v1045_v46 = vcombine.high %v496_v42, %v496_v42 }
 0x2ba   :  { %433 = vmax.xlane.f32.xlu0 %v432_v47 }
 0x347   :  { %v434_v48 = vpop.xlane.xlu0 %433 }
 0x348   :  { %v435_v49 = vsub.f32 %v431_v0, %v434_v48 }
 0x34a   :  { %v436_v50 = vmul.f32 1.442695, %v435_v49 }
 0x34c   :  { %1104 = vpow2.f32 %v436_v50  ;;  %v1044_v50 = vcombine.low %v496_v42, %v496_v42  ;;  %v933_v42 = vsub.s32 2, %v1197_v5 }
 0x34d   :  { %1106 = vlog2.f32 %v461_v55 }
 0x34e   :  { %1108 = vpow2.f32 %v447_v59 }
 0x356   :  { %v1105_v51 = vpop.eup %1104 }
 0x357   :  { %v438_v52 = vsel %vm105_vm0, %v1105_v51, 0.0  ;;  %v1107_v56 = vpop.eup %1106  ;;  %v485_v51 = vld [vmem:[%s1378_s6 + $0x8] sm:$0xff] }
 0x358   :  { %439 = vadd.xlane.f32.xlu1 %v438_v52  ;;  %v463_v57 = vmul.f32 0.6931472, %v1107_v56  ;;  %v1109_v62 = vpop.eup %1108  ;;  %v489_v52 = vld [vmem:[%s1378_s6 + $0x28] sm:$0xff]  ;;  %v487_v56 = vld [vmem:[%s1378_s6 + $0x18] sm:$0xff] }
 0x359   :  { %v1057_v55 = vcombine.high %v485_v51, %v489_v52 }
 0x35a   :  { %v464_v58 = vsub.f32 0.0, %v463_v57  ;;  %v491_v57 = vld [vmem:[%s1378_s6 + $0x38] sm:$0xff] }
 0x35b   :  { %v1061_v59 = vcombine.high %v487_v56, %v491_v57 }
 0x35c   :  { %v465_v60 = vadd.f32 1e-12, %v464_v58  ;;  %v1056_v58 = vcombine.low %v485_v51, %v489_v52 }
 0x35e   :  { %1110 = vlog2.f32 %v465_v60  ;;  %v1060_v60 = vcombine.low %v487_v56, %v491_v57 }
 0x368   :  { %v1111_v2 = vpop.eup %1110 }
 0x369   :  { %451 = vrot.lane.b32.xlu1 %v449_v53, %s1123_s21  ;;  %v467_v3 = vmul.f32 0.6931472, %v1111_v2  ;;  %v1058_v53 = vcombine.low %v486_v29, %v490_v44 }
 0x36b   :  { %v468_v9 = vsub.f32 0.0, %v467_v3 }
 0x3e5   :  { %v440_v61 = vpop.xlane.xlu1 %439 }
 0x3e6   :  { %1112 = vlog2.f32 %v440_v61 }
 0x3e9   :  { %v452_v63 = vpop.permute.xlu1 %451 }
 0x3ea   :  { %v454_v1 = vmul.f32 %v1109_v62, %v452_v63 }
 0x3ec   :  { %456 = vrot.lane.b32.xlu1 %v454_v1, %s1124_s9 }
 0x3f0   :  { %v1113_v6 = vpop.eup %1112 }
 0x3f1   :  { %v442_v7 = vmul.f32 0.6931472, %v1113_v6 }
 0x3f3   :  { %v443_v8 = vadd.f32 %v442_v7, %v434_v48  ;;  %v1059_v48 = vcombine.high %v486_v29, %v490_v44  ;;  %v937_v44 = vsub.s32 3, %v1197_v5 }
 0x3f5   :  { %v444_v11 = vsub.f32 %v1263_v43, %v443_v8  ;;  %v925_v8 = vsub.s32 0, %v1197_v5 }
 0x3f7   :  { %v469_v12 = vadd.f32 %v468_v9, %v444_v11  ;;  %v445_v13 = vsel %vm1259_vm6, %v444_v11, %v1263_v43  ;;  %v921_v9 = vld [vmem:[%s1379_s8] sm:$0xff]  ;;  %v929_v11 = vsub.s32 1, %v1197_v5 }
 0x3f8   :  { %446 = vst [vmem:[%s1376_s12] sm:$0x3] %v445_v13  ;;  %v942_v31 = vrot.slane %v921_v9, %v941_v24  ;;  %v946_v34 = vrot.slane %v921_v9, %v945_v26 }
 0x3f9   :  { %v470_v14 = vmul.f32 1.4925373, %v469_v12  ;;  %v926_v12 = vrot.slane %v921_v9, %v925_v8 }
 0x3fb   :  { %v471_v15 = vsel %vm1259_vm6, %v470_v14, -inf  ;;  %v930_v14 = vrot.slane %v921_v9, %v929_v11 }
 0x3fc   :  { %v472_v16 = vsel %vm105_vm0, %v471_v15, -inf }
 0x3fd   :  { %473 = vmax.xlane.f32.xlu0 %v472_v16 }
 0x45e   :  { %v457_v0 = vpop.permute.xlu1 %456 }
 0x45f   :  { %v459_v49 = vadd.f32 %v457_v0, %v1263_v43  ;;  %v544_v43 = vsel %vm524_vm7, %v1044_v50, 0 }
 0x461   :  { %v483_v54 = vpack.c.bf16 %v459_v49, %v459_v49 }
 0x48a   :  { %v474_v17 = vpop.xlane.xlu0 %473 }
 0x48b   :  { %v475_v18 = vsub.f32 %v471_v15, %v474_v17 }
 0x48d   :  { %v476_v19 = vmul.f32 1.442695, %v475_v18 }
 0x48f   :  { %1114 = vpow2.f32 %v476_v19 }
 0x499   :  { %v1115_v20 = vpop.eup %1114 }
 0x49a   :  { %v478_v21 = vsel %vm105_vm0, %v1115_v20, 0.0 }
 0x49b   :  { %479 = vadd.xlane.f32.xlu0 %v478_v21 }
 0x528   :  { %v480_v35 = vpop.xlane.xlu0 %479 }
 0x529   :  { %1116 = vrcp.f32 %v480_v35 }
 0x533   :  { %v1117_v28 = vpop.eup %1116 }
 0x534   :  { %v482_v40 = vmul.f32 %v1117_v28, %v1115_v20 }
 0x536   :  { %v492_v41 = vpack.c.bf16 %v482_v40, %v482_v40 }
 0x538   :  { %498 = vrot.lane.b32.xlu0 %v492_v41, %s1125_s14 }
 0x5aa   :  { %v499_v47 = vpop.permute.xlu0 %498 }
 0x5ab   :  { %1047 = vmatmul.mubr.msk.bf16.vlgmr.msra.gmra.mrb[12].mxu1 %vm520_vm8, %v499_v47  ;;  %1051 = vmatmul.mubr.msk.bf16.vlgmr.msra.gmra.mrb[12].mxu0 %vm520_vm8, %v499_v47 }
 0x5ac   :  { %591 = vmatpush1.bf16.msra.mxu1 %v532_v45  ;;  %758 = vmatpush1.bf16.msra.mxu0 %v1054_v38 }
 0x5ad   :  { %622 = vmatprep.mubr.bf16.mxu1 %v1119_v4  ;;  %1052 = vmatprep.subr.msk.bf16.mxu1 %vm524_vm7, %v1045_v46  ;;  %v934_v46 = vrot.slane %v921_v9, %v933_v42 }
 0x5ae   :  { %789 = vmatprep.mubr.bf16.mxu0 %v1119_v4  ;;  %839 = vmatprep.subr.bf16.mxu0 %v1059_v48 }
 0x5b3   :  { %1049 = vmatmul.mubr.msk.bf16.vlgmr.msra.gmra.mrb[16].mxu1 %vm520_vm8, %v499_v47  ;;  %1062 = vmatmul.mubr.msk.bf16.vlgmr.msra.gmra.mrb[16].mxu0 %vm753_vm9, %v483_v54 }
 0x5b4   :  { %673 = vmatpush1.bf16.msra.mxu1 %v544_v43  ;;  %840 = vmatpush1.bf16.msra.mxu0 %v1058_v53 }
 0x5b5   :  { %704 = vmatprep.mubr.bf16.mxu1 %v1119_v4  ;;  %798 = vmatprep.subr.bf16.mxu1 %v1057_v55  ;;  %v953_v55 = vsub.s32 7, %v1197_v5 }
 0x5b6   :  { %871 = vmatprep.mubr.bf16.mxu0 %v1119_v4 }
 0x5bb   :  { %1053 = vmatmul.mubr.msk.bf16.vlgmr.msra.gmra.mrb[20].mxu1 %vm520_vm8, %v499_v47  ;;  %1064 = vmatmul.mubr.msk.bf16.vlgmr.msra.gmra.mrb[20].mxu0 %vm753_vm9, %v483_v54  ;;  %v938_v47 = vrot.slane %v921_v9, %v937_v44 }
 0x5bc   :  { %799 = vmatpush1.bf16.msra.mxu1 %v1056_v58  ;;  %830 = vmatprep.mubr.bf16.mxu1 %v1119_v4 }
 0x5bd   :  { %880 = vmatprep.subr.bf16.mxu1 %v1061_v59 }
 0x5c3   :  { %1063 = vmatmul.mubr.msk.bf16.vlgmr.msra.gmra.mrb[24].mxu1 %vm753_vm9, %v483_v54 }
 0x5c4   :  { %881 = vmatpush1.bf16.msra.mxu1 %v1060_v60  ;;  %912 = vmatprep.mubr.bf16.mxu1 %v1119_v4 }
 0x5cb   :  { %1065 = vmatmul.mubr.msk.bf16.vlgmr.msra.gmra.mrb[28].mxu1 %vm753_vm9, %v483_v54  ;;  %v949_v54 = vsub.s32 6, %v1197_v5 }
 0x5cd   :  { %v950_v57 = vrot.slane %v921_v9, %v949_v54 }
 0x67e   :  { %v583_v61 = vpop.f32.mrb[12].mxu1  ;;  %v665_v62 = vpop.f32.mrb[12].mxu0 }
 0x67f   :  { %v585_v63 = vpop.f32.mrb[13].mxu1  ;;  %v667_v1 = vpop.f32.mrb[13].mxu0 }
 0x680   :  { %v587_v2 = vpop.f32.mrb[14].mxu1  ;;  %v669_v3 = vpop.f32.mrb[14].mxu0 }
 0x681   :  { %v588_v6 = vpop.f32.mrb[15].mxu1  ;;  %v670_v7 = vpop.f32.mrb[15].mxu0 }
 0x686   :  { %v624_v4 = vpop.f32.mrb[16].mxu1  ;;  %v791_v13 = vpop.f32.mrb[16].mxu0 }
 0x687   :  { %v792_v15 = vadd.f32 %v791_v13, %v583_v61  ;;  %v626_v16 = vpop.f32.mrb[17].mxu1  ;;  %v793_v17 = vpop.f32.mrb[17].mxu0  ;;  %v954_v61 = vrot.slane %v921_v9, %v953_v55 }
 0x688   :  { %v794_v18 = vadd.f32 %v793_v17, %v585_v63  ;;  %v628_v19 = vpop.f32.mrb[18].mxu1  ;;  %v795_v20 = vpop.f32.mrb[18].mxu0 }
 0x689   :  { %v963_v21 = vadd.f32 %v926_v12, %v792_v15  ;;  %v629_v22 = vpop.f32.mrb[19].mxu1  ;;  %v796_v23 = vpop.f32.mrb[19].mxu0 }
 0x68a   :  { %v964_v25 = vadd.f32 %v930_v14, %v794_v18 }
 0x68c   :  { %v979_v30 = vcombine.low %v963_v21, %v964_v25 }
 0x68e   :  { %v706_v32 = vpop.f32.mrb[20].mxu1  ;;  %v873_v33 = vpop.f32.mrb[20].mxu0  ;;  %v987_v58 = vrot.slane %v979_v30, %v1208_v10 }
 0x68f   :  { %v874_v35 = vadd.f32 %v873_v33, %v665_v62  ;;  %v708_v36 = vpop.f32.mrb[21].mxu1  ;;  %v875_v37 = vpop.f32.mrb[21].mxu0 }
 0x690   :  { %v876_v38 = vadd.f32 %v875_v37, %v667_v1  ;;  %v710_v39 = vpop.f32.mrb[22].mxu1  ;;  %v877_v28 = vpop.f32.mrb[22].mxu0 }
 0x691   :  { %v967_v40 = vadd.f32 %v942_v31, %v874_v35  ;;  %v711_v41 = vpop.f32.mrb[23].mxu1  ;;  %v878_v27 = vpop.f32.mrb[23].mxu0 }
 0x692   :  { %v968_v29 = vadd.f32 %v946_v34, %v876_v38 }
 0x694   :  { %v996_v45 = vcombine.low %v967_v40, %v968_v29 }
 0x696   :  { %v832_v0 = vpop.f32.mrb[24].mxu1  ;;  %v1004_v11 = vrot.slane %v996_v45, %v1208_v10 }
 0x697   :  { %v833_v48 = vadd.f32 %v832_v0, %v624_v4  ;;  %v834_v49 = vpop.f32.mrb[25].mxu1 }
 0x698   :  { %v835_v50 = vadd.f32 %v834_v49, %v626_v16  ;;  %v836_v51 = vpop.f32.mrb[26].mxu1 }
 0x699   :  { %v965_v52 = vadd.f32 %v934_v46, %v833_v48  ;;  %v837_v53 = vpop.f32.mrb[27].mxu1 }
 0x69a   :  { %v966_v43 = vadd.f32 %v938_v47, %v835_v50 }
 0x69c   :  { %v980_v56 = vcombine.low %v965_v52, %v966_v43 }
 0x69e   :  { %v994_v59 = vrot.slane %v980_v56, %v1208_v10  ;;  %v914_v60 = vpop.f32.mrb[28].mxu1 }
 0x69f   :  { %v915_v62 = vadd.f32 %v914_v60, %v706_v32  ;;  %v916_v63 = vpop.f32.mrb[29].mxu1 }
 0x6a0   :  { %v995_v1 = vcombine.low %v987_v58, %v994_v59  ;;  %v917_v2 = vadd.f32 %v916_v63, %v708_v36  ;;  %v918_v3 = vpop.f32.mrb[30].mxu1 }
 0x6a1   :  { %v969_v6 = vadd.f32 %v950_v57, %v915_v62  ;;  %v919_v7 = vpop.f32.mrb[31].mxu1 }
 0x6a2   :  { %1015 = vst [vmem:[%s1380_s11] sm:$0xff] %v995_v1  ;;  %v970_v5 = vadd.f32 %v954_v61, %v917_v2 }
 0x6a4   :  { %v997_v8 = vcombine.low %v969_v6, %v970_v5 }
 0x6a6   :  { %v1011_v12 = vrot.slane %v997_v8, %v1208_v10 }
 0x6a8   :  { %v1012_v4 = vcombine.low %v1004_v11, %v1011_v12 }
 0x6aa   :  { %1016 = vst [vmem:[%s1380_s11 + $0x8] sm:$0xff] %v1012_v4 }

</bundles_post_ra>
